<compile_context>
chip_gen: v5e
topology: v5e:2x2
jax: 0.10.0
libtpu: 0.0.40
codegen_flags: <defaults>
</compile_context>

<pallas_src>
import numpy as np
import jax
import jax.numpy as jnp
from jax import lax
from jax.experimental import pallas as pl
from jax.experimental.pallas import tpu as pltpu

KERNEL = 16
STRIDE = 8
PAD_LO = KERNEL // 2                      # 8   (left / top)
PAD_HI = KERNEL // 2 - (KERNEL + 1) % 2   # 7   (right / bottom)


def _norm_taps() -> np.ndarray:
    # Matches the PyTorch buffer: sin ramp, float64 math, normalized.
    k = np.sin(np.arange(KERNEL) / KERNEL * np.pi).astype(np.float64)
    return k / k.sum()                    # outer(kn, kn) == torch filter


def _downsample_matrix(size: int) -> np.ndarray:
    """(size, n_out) matrix folding reflection padding + 1-D filter taps.

    out[o] = sum_s R[s, o] * x[s]  ==  conv1d(reflect_pad_8_7(x), kn, stride=8)[o]
    """
    kn = _norm_taps()
    padded = size + PAD_LO + PAD_HI
    n_out = (padded - KERNEL) // STRIDE + 1
    r = np.zeros((size, n_out), dtype=np.float64)
    for o in range(n_out):
        for t in range(KERNEL):
            j = o * STRIDE + t - PAD_LO        # index into the unpadded signal
            if j < 0:                           # reflect (no edge repeat),
                j = -j                          # same as torch ReflectionPad2d
            elif j >= size:
                j = 2 * (size - 1) - j
            r[j, o] += kn[t]
    return r.astype(np.float32)


def _downsample_kernel(rh_ref, rw_ref, x_ref, o_ref):
    """One (batch, channel-tile) block per grid step.

    rh_ref : (H, Ho)           H-pass matrix, f32 (resident, constant index map)
    rw_ref : (W, Wo)           W-pass matrix, input dtype (resident)
    x_ref  : (1, Ct, H, W)     input tile (native NCHW layout, W on lanes)
    o_ref  : (1, Ct, Ho, Wo)   output tile
    """
    x = x_ref[0]                                   # (Ct, H, W), native dtype
    ct, h, w = x.shape
    wo = rw_ref.shape[1]
    ho = rh_ref.shape[1]

    # Pass 1 (W contraction, lane dim): one flat large-M matmul on the MXU.
    # NOTE(v5e, W >= 512, f32 inputs): the dense W-length contraction can be
    # made cheaper with a banded split of R_W or bf16 operands if it ever
    # becomes MXU-bound; unnecessary on v6e/v7x (HBM-bound).
    t = lax.dot_general(
        x.reshape(ct * h, w), rw_ref[...],
        dimension_numbers=(((1,), (0,)), ((), ())),
        preferred_element_type=jnp.float32,
        precision=lax.Precision.HIGHEST)           # (Ct*H, Wo) f32

    # Transpose the 8x-reduced intermediate so H lands on lanes (XLU is idle
    # here), then run pass 2 as a second flat matmul.
    tt = jnp.swapaxes(t.reshape(ct, h, wo), 1, 2).reshape(ct * wo, h)
    o = lax.dot_general(
        tt, rh_ref[...],
        dimension_numbers=(((1,), (0,)), ((), ())),
        preferred_element_type=jnp.float32,
        precision=lax.Precision.HIGHEST)           # (Ct*Wo, Ho) f32

    o = jnp.swapaxes(o.reshape(ct, wo, ho), 1, 2)  # (Ct, Ho, Wo) — tiny
    o_ref[0] = o.astype(o_ref.dtype)


def _vmem_limit_bytes() -> int:
    """Generation-aware VMEM limit: ~3/4 of physical, capped at 96 MiB."""
    cap = None
    try:
        cap = getattr(pltpu.get_tpu_info(), "vmem_capacity_bytes", None)
    except Exception:
        cap = None
    if not cap:
        cap = 64 * 1024 * 1024          # conservative (v7x per-core size)
    return int(min(cap * 3 // 4, 96 * 1024 * 1024))


def _pick_channel_tile(N, C, H, W, Ho, Wo, itemsize, vmem_limit) -> int:
    """Largest divisor of C whose per-step VMEM footprint fits the budget,
    while keeping >= 4 grid steps when possible (2 TensorCores on v7x)."""
    per_ch = (
        2 * H * W * itemsize            # input tile, double-buffered pipeline
        + H * Wo * 4                    # pass-1 f32 intermediate
        + Wo * H * 4                    # transposed intermediate
        + Wo * Ho * 4                   # pass-2 f32 result
        + Ho * Wo * itemsize            # transposed / cast result
        + 2 * Ho * Wo * itemsize        # output tile, double-buffered pipeline
    )
    const = 2 * (H * Ho + W * Wo) * 4 + (2 << 20)   # R matrices + slack
    ct_max = max(1, (vmem_limit - const) // per_ch)
    min_steps = min(4, N * C)           # ct=1 always satisfies this
    best = 1
    for d in range(1, C + 1):
        if C % d == 0 and d <= ct_max and N * (C // d) >= min_steps:
            best = d
    return best


def filtered_downsample_2d(x_nchw: jnp.ndarray) -> jnp.ndarray:
    """Equivalent of FilteredDownsample2D(channels=C).forward(x), x in NCHW."""
    N, C, H, W = x_nchw.shape
    if H <= PAD_LO or W <= PAD_LO:
        raise ValueError("reflection padding of 8 requires H, W >= 9")

    Ho = (H + PAD_LO + PAD_HI - KERNEL) // STRIDE + 1
    Wo = (W + PAD_LO + PAD_HI - KERNEL) // STRIDE + 1

    rh_np = _downsample_matrix(H)                   # (H, Ho)
    rw_np = _downsample_matrix(W)                   # (W, Wo)
    # Pass-1 operand dtype must match x so no full-tile up-cast is materialized
    # (the MXU takes bf16 operands with f32 accumulation directly).
    rw_dtype = jnp.float32 if x_nchw.dtype == jnp.float32 else x_nchw.dtype
    rw = jnp.asarray(rw_np, dtype=rw_dtype)
    rh = jnp.asarray(rh_np)                         # pass 2 runs on f32 data

    vmem_limit = _vmem_limit_bytes()
    ct = _pick_channel_tile(N, C, H, W, Ho, Wo, x_nchw.dtype.itemsize,
                            vmem_limit)
    grid = (N, C // ct)

    return pl.pallas_call(
        _downsample_kernel,
        out_shape=jax.ShapeDtypeStruct((N, C, Ho, Wo), x_nchw.dtype),
        grid=grid,
        in_specs=[
            pl.BlockSpec((H, Ho), lambda n, c: (0, 0)),
            pl.BlockSpec((W, Wo), lambda n, c: (0, 0)),
            pl.BlockSpec((1, ct, H, W), lambda n, c: (n, c, 0, 0)),
        ],
        out_specs=pl.BlockSpec((1, ct, Ho, Wo), lambda n, c: (n, c, 0, 0)),
        compiler_params=pltpu.CompilerParams(
            dimension_semantics=("parallel", "parallel"),
            vmem_limit_bytes=vmem_limit),
    )(rh, rw, x_nchw)


def _reference(x_nchw: jnp.ndarray) -> jnp.ndarray:
    """Pure-JAX reference mirroring the PyTorch module exactly."""
    N, C, H, W = x_nchw.shape
    xpad = jnp.pad(x_nchw, ((0, 0), (0, 0), (PAD_LO, PAD_HI), (PAD_LO, PAD_HI)),
                   mode="reflect")
    k = np.sin(np.arange(KERNEL) / KERNEL * np.pi)
    f = (k[:, None] * k[None, :]).astype(np.float64)
    f = (f / f.sum()).astype(np.float32)
    w = jnp.broadcast_to(jnp.asarray(f)[None, None], (C, 1, KERNEL, KERNEL))
    return lax.conv_general_dilated(
        xpad, w, window_strides=(STRIDE, STRIDE), padding="VALID",
        dimension_numbers=("NCHW", "OIHW", "NCHW"), feature_group_count=C,
        precision=lax.Precision.HIGHEST)


if __name__ == "__main__":
    key = jax.random.PRNGKey(0)
    N, C, H, W = 2, 4, 16, 16
    x = jax.random.normal(key, (N, C, H, W), dtype=jnp.float32)

    out = jax.block_until_ready(filtered_downsample_2d(x))
    ref = jax.block_until_ready(_reference(x))

    assert out.shape == ref.shape == (N, C, 2, 2), (out.shape, ref.shape)
    np.testing.assert_allclose(np.asarray(out), np.asarray(ref),
                               rtol=1e-4, atol=1e-5)
    print("KERNEL_OK")
</pallas_src>

<mosaic_0001>
module attributes {stable_mosaic.version = 11 : i64} {
  func.func @_downsample_kernel(%arg0: i32, %arg1: i32, %arg2: memref<16x2xf32, #tpu.memory_space<vmem>>, %arg3: memref<16x2xf32, #tpu.memory_space<vmem>>, %arg4: memref<1x2x16x16xf32, #tpu.memory_space<vmem>>, %arg5: memref<1x2x2x2xf32, #tpu.memory_space<vmem>>) attributes {dimension_semantics = [#tpu.dimension_semantics<parallel>, #tpu.dimension_semantics<parallel>], iteration_bounds = array<i64: 2, 2>, scalar_prefetch = 0 : i64, scratch_operands = 0 : i64, tpu.core_type = #tpu.core_type<tc>, window_params = [{pipeline_mode = #tpu.pipeline_mode<synchronous>, transform_indices = @transform_0, window_bounds = array<i64: 16, 2>}, {pipeline_mode = #tpu.pipeline_mode<synchronous>, transform_indices = @transform_1, window_bounds = array<i64: 16, 2>}, {transform_indices = @transform_2, window_bounds = array<i64: 1, 2, 16, 16>}, {transform_indices = @transform_3, window_bounds = array<i64: 1, 2, 2, 2>}]} {
    %c0 = arith.constant 0 : index
    %c0_0 = arith.constant 0 : index
    %c0_1 = arith.constant 0 : index
    %c0_2 = arith.constant 0 : index
    %0 = vector.load %arg4[%c0, %c0_0, %c0_1, %c0_2] : memref<1x2x16x16xf32, #tpu.memory_space<vmem>>, vector<1x2x16x16xf32>
    %1 = vector.shape_cast %0 : vector<1x2x16x16xf32> to vector<2x16x16xf32>
    %2 = vector.shape_cast %1 : vector<2x16x16xf32> to vector<32x16xf32>
    %c0_3 = arith.constant 0 : index
    %c0_4 = arith.constant 0 : index
    %3 = vector.load %arg3[%c0_3, %c0_4] : memref<16x2xf32, #tpu.memory_space<vmem>>, vector<16x2xf32>
    %cst = arith.constant dense<0.000000e+00> : vector<32x2xf32>
    %4 = tpu.matmul %2, %3, %cst {dimension_numbers = #tpu.dot_dimension_numbers<[1], [0], [0], [1], [0, 0, 1, 1], [], []>, precision = #tpu.contract_precision<fp32>} : vector<32x16xf32>, vector<16x2xf32>, vector<32x2xf32> -> vector<32x2xf32>
    %5 = vector.shape_cast %4 : vector<32x2xf32> to vector<2x16x2xf32>
    %6 = tpu.transpose %5, [0, 2, 1] : vector<2x16x2xf32> -> vector<2x2x16xf32>
    %7 = vector.shape_cast %6 : vector<2x2x16xf32> to vector<4x16xf32>
    %c0_5 = arith.constant 0 : index
    %c0_6 = arith.constant 0 : index
    %8 = vector.load %arg2[%c0_5, %c0_6] : memref<16x2xf32, #tpu.memory_space<vmem>>, vector<16x2xf32>
    %cst_7 = arith.constant dense<0.000000e+00> : vector<4x2xf32>
    %9 = tpu.matmul %7, %8, %cst_7 {dimension_numbers = #tpu.dot_dimension_numbers<[1], [0], [0], [1], [0, 0, 1, 1], [], []>, precision = #tpu.contract_precision<fp32>} : vector<4x16xf32>, vector<16x2xf32>, vector<4x2xf32> -> vector<4x2xf32>
    %10 = vector.shape_cast %9 : vector<4x2xf32> to vector<2x2x2xf32>
    %11 = tpu.transpose %10, [0, 2, 1] : vector<2x2x2xf32> -> vector<2x2x2xf32>
    %c0_8 = arith.constant 0 : index
    %c0_9 = arith.constant 0 : index
    %c0_10 = arith.constant 0 : index
    %c0_11 = arith.constant 0 : index
    %12 = vector.load %arg5[%c0_8, %c0_9, %c0_10, %c0_11] : memref<1x2x2x2xf32, #tpu.memory_space<vmem>>, vector<1x2x2x2xf32>
    %13 = vector.shape_cast %12 : vector<1x2x2x2xf32> to vector<2x2x2xf32>
    %14 = vector.shape_cast %11 : vector<2x2x2xf32> to vector<1x2x2x2xf32>
    tpu.vector_store %arg5[%c0_8, %c0_9, %c0_10, %c0_11], %14 {strides = array<i32>} : memref<1x2x2x2xf32, #tpu.memory_space<vmem>>, vector<1x2x2x2xf32>,
    return
  }
  func.func @transform_0(%arg0: i32, %arg1: i32) -> (i32, i32) {
    %c0_i32 = arith.constant 0 : i32
    %c0_i32_0 = arith.constant 0 : i32
    %c0_i32_1 = arith.constant 0 : i32
    return %c0_i32, %c0_i32_0 : i32, i32
  }
  func.func @transform_1(%arg0: i32, %arg1: i32) -> (i32, i32) {
    %c0_i32 = arith.constant 0 : i32
    %c0_i32_0 = arith.constant 0 : i32
    %c0_i32_1 = arith.constant 0 : i32
    return %c0_i32, %c0_i32_0 : i32, i32
  }
  func.func @transform_2(%arg0: i32, %arg1: i32) -> (i32, i32, i32, i32) {
    %c0_i32 = arith.constant 0 : i32
    %c0_i32_0 = arith.constant 0 : i32
    %c0_i32_1 = arith.constant 0 : i32
    return %arg0, %arg1, %c0_i32, %c0_i32_0 : i32, i32, i32, i32
  }
  func.func @transform_3(%arg0: i32, %arg1: i32) -> (i32, i32, i32, i32) {
    %c0_i32 = arith.constant 0 : i32
    %c0_i32_0 = arith.constant 0 : i32
    %c0_i32_1 = arith.constant 0 : i32
    return %arg0, %arg1, %c0_i32, %c0_i32_0 : i32, i32, i32, i32
  }
}

</mosaic_0001>

<bundles_post_ra>
// kernel: tpu_custom_call.1
= control target key start
LH: loop header
LB: loop body
LE: loop exit
PB: predicated region body
PF: predicated region fallthrough
CT: control target
= control target key end

     0   :  { %8 = vsyncpa [#allocation3], 0  ;;  %s1253_s0 = inlined_call_operand.vmem [shape: f32[16,2], index: 0, kind: input, shape index: {}]   ;;  %s1254_s1 = inlined_call_operand.vmem [shape: f32[16,2], index: 1, kind: input, shape index: {}]   ;;  %s1255_s2 = inlined_call_operand.hbm [shape: f32[2,4,16,16], index: 2, kind: input, shape index: {}]   ;;  %s1256_s3 = inlined_call_operand.vmem [shape: f32[2,4,2,2], index: 3, kind: output, shape index: {}]  }
   0x1   :  { %10 = vsyncpa [#allocation3 + $0x1], 0  ;;  %s1105_s12 = smov 0   ;;  %s1107_s13 = smov 0  }
   0x2   :  { %s1109_s14 = smov 0   ;;  %s1111_s15 = smov 0  }
   0x3   :  { %s1113_s16 = smov 0   ;;  %s1115_s17 = smov 0  }
   0x4   :  { %s1117_s18 = smov 0   ;;  %s1119_s19 = smov 0  }
   0x5 LB: > { %s894_s20 = sadd.s32 4294967295, %s1081_s19   ;;  %s25_s21 = sadd.s32 1, %s1073_s17  ;;  %s1081_s19 = sphi %s1119_s19, %s16_s19   ;;  %s1077_s18 = sphi %s1117_s18, %s1265_s18   ;;  %s1073_s17 = sphi %s1115_s17, %s1264_s17   ;;  %s1069_s16 = sphi %s1113_s16, %s1263_s16   ;;  %s1065_s15 = sphi %s1111_s15, %s1262_s15   ;;  %s1061_s14 = sphi %s1109_s14, %s1261_s14   ;;  %s1057_s13 = sphi %s1107_s13, %s1260_s13   ;;  %s1053_s12 = sphi %s1105_s12, %s1259_s12  }
   0x6   : > { %p26_p0 = scmp.ge.s32.totalorder %s25_s21, 2  ;;  %s28_s22 = sadd.s32 1, %s1077_s18 }
   0x7   : > { %s79_s23 = sadd.s32 1, %s1061_s14  ;;  %p86_p1 = scmp.ne.s32.totalorder %s1061_s14, %s1057_s13 }
   0x8   : > { %s1267_s21 = smov (%p26_p0, %s25_s21), 0  ;;  %s1269_s22 = smov (!%p26_p0, %s28_s22), %s1077_s18 }
   0x9   : > { %s75_s24 = ssub.s32 %s1073_s17, %s1267_s21  ;;  %p87_p2 = scmp.eq.s32.totalorder %s1081_s19, 0 }
   0xa   : > { %p30_p3 = scmp.ge.s32.totalorder %s1269_s22, 2  ;;  %p92_p4 = scmp.ne.s32.totalorder %s1057_s13, %s1053_s12 }
   0xb   : > { %p1156_p5 = por %p87_p2, %p86_p1  ;;  %p93_p6 = scmp.eq.s32.totalorder %s894_s20, 0 }
   0xc   : > { %s1271_s22 = smov (%p30_p3, %s1269_s22), 0  ;;  %p917_p8 = scmp.lt.s32.totalorder %s1081_s19, 4 }
   0xd   : > { %p1162_p7 = por %p93_p6, %p92_p4  ;;  %s74_s27 = ssub.s32 %s1077_s18, %s1271_s22 }
   0xe   : > { %s76_s28 = sor.u32 %s75_s24, %s74_s27  ;;  %s150_s29 = sand.u32 1, %s1061_s14  }
   0xf   : > { %p77_p9 = scmp.eq.s32.totalorder %s76_s28, 0  ;;  %s898_s30 = sshll.u32 %s150_s29, 5 }
  0x10   : > { %s910_s4 = sshll.u32 %s1073_s17, 2  ;;  %s901_s6 = sshll.u32 %s1077_s18, 3 }
  0x11   : > { %s1172_s5 = scalar_select %p77_p9, %s1061_s14, %s79_s23  }
  0x12   : > { %s160_s7 = sadd.s32 %s910_s4, %s901_s6  ;;  %s154_s8 = scalar_lea.vmem [#allocation2], %s898_s30 }
  0x13   : > { %s165_s9 = sshll.u32 %s154_s8, 4  ;;  %s902_s10 = sshll.u32 %s160_s7, 3  ;;  %s166_s9 = int_to_ptr.vmem [resolvable:$true] %s165_s9 }
  0x14   : > { %s162_s20 = scalar_lea.hbm %s1255_s2, %s902_s10  ;;  %p914_p10 = pnand %p917_p8, %p1156_p5 }
  0x15   : > { %s163_s24 = sshll.u32 %s162_s20, 4  ;;  %p903_p11 = scmp.ge.s32.totalorder %s1081_s19, 1  ;;  %s164_s24 = int_to_ptr.hbm [resolvable:$true] %s163_s24 }
  0x16   : > { %s151_s27 = scalar_lea.sflag [#allocation3], %s150_s29  ;;  %s1083_s23 = smov 128  }
  0x17   : > { %s1084_s28 = smov 8   ;;  %p173_p12 = scmp.lt.s32.totalorder %s1081_s19, 5 }
  0x18   : > { %916 = dma.hbm_to_vmem [thread:$0]  (!%p914_p10), %s164_s24, 512, %s166_s9, %s151_s27, %s1083_s23, %s1083_s23, %s1084_s28  }
  0x19   : > { %p174_p13 = pnand %p903_p11, %p173_p12 }
  0x1a   : > { %s179_s30 = sand.u32 (!%p174_p13), 1, %s1057_s13  }
  0x1b   : > { %177 = sbr.rel (%p174_p13) target bundleno = 723 (0x2d3), region = 32  ;;  %s904_s4 = sshll.u32 (!%p174_p13), %s179_s30, 5 }
  0x1c   : > { %s180_s6 = scalar_lea.sflag (!%p174_p13), [#allocation3], %s179_s30  ;;  %s1185_s7 = scalar_lea.vmem (!%p174_p13), [#allocation2], %s904_s4 }
  0x20   : > { %1048 = dma.done.wait (%p1162_p7), %s180_s6, 512  }
  0x21   : > { %1050 = vsyncadd (%p1162_p7), %s180_s6, 4294966784  ;;  %vm228_vm0 = vcmask 130048   ;;  %v227_v0 = vld [vmem:[%s1254_s1 + $0x8] sm:$0xff]  ;;  %v226_v1 = vld [vmem:[%s1254_s1] sm:$0xff]  ;;  %s905_s20 = sshll.u32 %s1065_s15, 1  ;;  %p213_p0 = scmp.lt.s32.totalorder %s1069_s16, 1 }
  0x22   : > { %v222_v2 = vld [vmem:[%s1185_s7] sm:$0xff]  ;;  %v255_v3 = vand.u32 4294901760, %v227_v0  ;;  %v257_v4 = vand.u32 4294901760, %v226_v1  ;;  %v223_v6 = vld [vmem:[%s1185_s7 + $0x8] sm:$0xff]  ;;  %v224_v9 = vld [vmem:[%s1185_s7 + $0x10] sm:$0xff]  ;;  %p215_p1 = scmp.lt.s32.totalorder %s905_s20, 3 }
  0x23   : > { %v230_v5 = vsel %vm228_vm0, %v222_v2, 0  ;;  %v233_v8 = vsel %vm228_vm0, %v223_v6, 0  ;;  %v236_v17 = vsel %vm228_vm0, %v224_v9, 0  ;;  %v225_v27 = vld [vmem:[%s1185_s7 + $0x18] sm:$0xff]  ;;  %v558_v53 = vld [vmem:[%s1253_s0 + $0x8] sm:$0xff]  ;;  %s1273_s16 = smov (!%p213_p0, %s1069_s16), 1 }
  0x24   : > { %v259_v7 = vand.u32 4294901760, %v230_v5  ;;  %v307_v10 = vsub.f32 %v227_v0, %v255_v3  ;;  %256 = vmatpush.msra.mxu0 %v255_v3  ;;  %v313_v11 = vsub.f32 %v226_v1, %v257_v4  ;;  %391 = vmatpush.msra.mxu3 %v255_v3  ;;  %v267_v12 = vand.u32 4294901760, %v233_v8  ;;  %s1275_s20 = smov (!%p215_p1, %s905_s20), 3  ;;  %s906_s24 = sshll.u32 %s1273_s16, 2 }
  0x25   : > { %v275_v23 = vand.u32 4294901760, %v236_v17  ;;  %v239_v30 = vsel %vm228_vm0, %v225_v27, 0  ;;  %v1208_v54 = vand.u32 4294901760, %v558_v53  ;;  %s218_s27 = sadd.s32 %s906_s24, %s1275_s20  ;;  %vm793_vm1 = vcmask 9216  }
  0x26   : > { %v260_v13 = vsub.f32 %v230_v5, %v259_v7  ;;  %351 = vmatpush.msra.mxu2 %v307_v10  ;;  %258 = vmatpush.msra.mxu0 %v257_v4  ;;  %v308_v14 = vand.u32 4294901760, %v307_v10  ;;  %v314_v15 = vand.u32 4294901760, %v313_v11  ;;  %v268_v16 = vsub.f32 %v233_v8, %v267_v12  ;;  %s907_s23 = sshll.u32 %s218_s27, 1 }
  0x27   : > { %393 = vmatpush.msra.mxu3 %v257_v4  ;;  %v276_v29 = vsub.f32 %v236_v17, %v275_v23  ;;  %v283_v33 = vand.u32 4294901760, %v239_v30  ;;  %v1212_v59 = vsub.f32 %v558_v53, %v1208_v54  ;;  %s220_s4 = scalar_lea.vmem %s1256_s3, %s907_s23 }
  0x28   : > { %v261_v18 = vand.u32 4294901760, %v260_v13  ;;  %354 = vmatpush.msra.mxu2 %v313_v11  ;;  %v309_v19 = vsub.f32 %v307_v10, %v308_v14  ;;  %436 = vmatpush.msrb.mxu0 %v308_v14  ;;  %v315_v20 = vsub.f32 %v313_v11, %v314_v15  ;;  %v269_v22 = vand.u32 4294901760, %v268_v16 }
  0x29   : > { %357 = vmatmul.f32.vlgmr.msra.gmra.mxu2 %v260_v13  ;;  %v277_v32 = vand.u32 4294901760, %v276_v29  ;;  %v284_v35 = vsub.f32 %v239_v30, %v283_v33  ;;  %v610_v62 = vand.u32 4294901760, %v1212_v59 }
  0x2a   : > { %v262_v21 = vsub.f32 %v260_v13, %v261_v18  ;;  %397 = vmatmul.f32.vlgmr.msra.gmra.mxu3 %v261_v18  ;;  %v310_v24 = vand.u32 4294901760, %v309_v19  ;;  %v316_v25 = vand.u32 4294901760, %v315_v20  ;;  %440 = vmatpush.msrb.mxu0 %v314_v15  ;;  %v270_v28 = vsub.f32 %v268_v16, %v269_v22 }
  0x2b   : > { %v278_v34 = vsub.f32 %v276_v29, %v277_v32  ;;  %v285_v37 = vand.u32 4294901760, %v284_v35  ;;  %582 = vmatpush.msrb.mxu2 %v1208_v54  ;;  %v611_v1 = vsub.f32 %v1212_v59, %v610_v62 }
  0x2c   : > { %v263_v26 = vand.u32 4294901760, %v262_v21  ;;  %311 = vmatpush.msra.mxu1 %v310_v24  ;;  %v271_v31 = vand.u32 4294901760, %v270_v28 }
  0x2d   : > { %v279_v36 = vand.u32 4294901760, %v278_v34  ;;  %v286_v38 = vsub.f32 %v284_v35, %v285_v37 }
  0x2e   : > { %264 = vmatmul.f32.vlgmr.msra.gmra.mxu0 %v263_v26  ;;  %317 = vmatpush.msra.mxu1 %v316_v25  ;;  %v557_v26 = vld [vmem:[%s1253_s0] sm:$0xff] }
  0x2f   : > { %319 = vmatmul.f32.vlgmr.msra.gmra.mxu1 %v259_v7  ;;  %v287_v39 = vand.u32 4294901760, %v286_v38  ;;  %v583_v27 = vand.u32 4294901760, %v557_v26 }
  0x30   : > { %473 = vmatpush.msrb.mxu1 %v255_v3  ;;  %v612_v3 = vand.u32 4294901760, %v611_v1 }
  0x31   : > { %362 = vmatmul.f32.gmra.mxu2 %v268_v16  ;;  %v615_v28 = vsub.f32 %v557_v26, %v583_v27 }
  0x32   : > { %403 = vmatmul.f32.gmra.mxu3 %v269_v22  ;;  %475 = vmatpush.msrb.mxu1 %v257_v4 }
  0x33   : > { %613 = vmatpush.msrb.mxu3 %v612_v3  ;;  %584 = vmatpush.msrb.mxu2 %v583_v27 }
  0x35   : > { %641 = vmatpush.msra.mxu2 %v1212_v59 }
  0x36   : > { %272 = vmatmul.f32.gmra.mxu0 %v271_v31 }
  0x37   : > { %323 = vmatmul.f32.gmra.mxu1 %v267_v12  ;;  %644 = vmatpush.msra.mxu2 %v615_v28 }
  0x39   : > { %367 = vmatmul.f32.gmra.mxu2 %v276_v29  ;;  %v616_v29 = vand.u32 4294901760, %v615_v28 }
  0x3a   : > { %409 = vmatmul.f32.gmra.mxu3 %v277_v32 }
  0x3b   : > { %v617_v30 = vsub.f32 %v615_v28, %v616_v29 }
  0x3d   : > { %v618_v31 = vand.u32 4294901760, %v617_v30 }
  0x3e   : > { %280 = vmatmul.f32.gmra.mxu0 %v279_v36 }
  0x3f   : > { %327 = vmatmul.f32.gmra.mxu1 %v275_v23  ;;  %619 = vmatpush.msrb.mxu3 %v618_v31 }
  0x41   : > { %372 = vmatmul.f32.gmra.mxu2 %v284_v35  ;;  %666 = vmatpush.msra.mxu3 %v1208_v54 }
  0x42   : > { %415 = vmatmul.f32.gmra.mxu3 %v285_v37 }
  0x43   : > { %668 = vmatpush.msra.mxu3 %v583_v27 }
  0x46   : > { %288 = vmatmul.f32.gmra.mxu0 %v287_v39 }
  0x47   : > { %331 = vmatmul.f32.gmra.mxu1 %v283_v33 }
  0x4e   : > { %442 = vmatmul.f32.vlgmr.msrb.gmra.mxu0 %v259_v7 }
  0x4f   : > { %477 = vmatmul.f32.vlgmr.msrb.gmra.mxu1 %v259_v7 }
  0x56   : > { %446 = vmatmul.f32.gmra.mxu0 %v267_v12 }
  0x57   : > { %481 = vmatmul.f32.gmra.mxu1 %v267_v12 }
  0x5e   : > { %450 = vmatmul.f32.gmra.mxu0 %v275_v23 }
  0x5f   : > { %485 = vmatmul.f32.gmra.mxu1 %v275_v23 }
  0x66   : > { %454 = vmatmul.f32.gmra.mxu0 %v283_v33 }
  0x67   : > { %489 = vmatmul.f32.gmra.mxu1 %v283_v33 }
  0xab   : > { %v265_v40 = vpop.f32.mrf.mxu0 }
  0xac   : > { %v320_v41 = vpop.f32.mrf.mxu1  ;;  %v358_v45 = vpop.f32.mrf.mxu2 }
  0xad   : > { %v398_v47 = vpop.f32.mrf.mxu3  ;;  %v321_v48 = vadd.f32 %v320_v41, %v265_v40 }
  0xaf   : > { %v359_v51 = vadd.f32 %v358_v45, %v321_v48 }
  0xb1   : > { %v399_v55 = vadd.f32 %v398_v47, %v359_v51 }
  0xb3   : > { %v273_v42 = vpop.f32.mrf.mxu0 }
  0xb4   : > { %v324_v43 = vpop.f32.mrf.mxu1  ;;  %v363_v52 = vpop.f32.mrf.mxu2 }
  0xb5   : > { %v325_v56 = vadd.f32 %v324_v43, %v273_v42  ;;  %v404_v57 = vpop.f32.mrf.mxu3 }
  0xb7   : > { %v364_v63 = vadd.f32 %v363_v52, %v325_v56 }
  0xb9   : > { %v405_v4 = vadd.f32 %v404_v57, %v364_v63 }
  0xbb   : > { %v281_v44 = vpop.f32.mrf.mxu0 }
  0xbc   : > { %v328_v46 = vpop.f32.mrf.mxu1  ;;  %v368_v2 = vpop.f32.mrf.mxu2 }
  0xbd   : > { %v329_v5 = vadd.f32 %v328_v46, %v281_v44  ;;  %v410_v8 = vpop.f32.mrf.mxu3 }
  0xbf   : > { %v369_v10 = vadd.f32 %v368_v2, %v329_v5 }
  0xc1   : > { %v411_v12 = vadd.f32 %v410_v8, %v369_v10 }
  0xc3   : > { %v289_v49 = vpop.f32.mrf.mxu0 }
  0xc4   : > { %v332_v50 = vpop.f32.mrf.mxu1  ;;  %v373_v14 = vpop.f32.mrf.mxu2 }
  0xc5   : > { %v333_v13 = vadd.f32 %v332_v50, %v289_v49  ;;  %v416_v20 = vpop.f32.mrf.mxu3 }
  0xc7   : > { %v374_v18 = vadd.f32 %v373_v14, %v333_v13 }
  0xc9   : > { %v417_v21 = vadd.f32 %v416_v20, %v374_v18 }
  0xcb   : > { %v443_v58 = vpop.f32.mrf.mxu0 }
  0xcc   : > { %v444_v60 = vadd.f32 %v443_v58, %v399_v55  ;;  %v478_v61 = vpop.f32.mrf.mxu1 }
  0xce   : > { %v479_v0 = vadd.f32 %v478_v61, %v444_v60 }
  0xd0   : > { %493 = vxpose.xlu0.b32.start [1/2] (short) (narrow) %v479_v0, 8 }
  0xd3   : > { %v447_v6 = vpop.f32.mrf.mxu0 }
  0xd4   : > { %v448_v7 = vadd.f32 %v447_v6, %v405_v4  ;;  %v482_v9 = vpop.f32.mrf.mxu1 }
  0xd6   : > { %v483_v11 = vadd.f32 %v482_v9, %v448_v7 }
  0xd8   : > { %494 = vxpose.xlu0.b32.end [2/2] (short) (narrow) %v483_v11, 8 }
  0xdb   : > { %v451_v15 = vpop.f32.mrf.mxu0 }
  0xdc   : > { %v452_v16 = vadd.f32 %v451_v15, %v411_v12  ;;  %v486_v17 = vpop.f32.mrf.mxu1 }
  0xde   : > { %v487_v19 = vadd.f32 %v486_v17, %v452_v16 }
  0xe0   : > { %525 = vxpose.xlu1.b32.start [1/2] (short) (narrow) %v487_v19, 8 }
  0xe3   : > { %v455_v22 = vpop.f32.mrf.mxu0 }
  0xe4   : > { %v456_v23 = vadd.f32 %v455_v22, %v417_v21  ;;  %v490_v24 = vpop.f32.mrf.mxu1 }
  0xe6   : > { %v491_v25 = vadd.f32 %v490_v24, %v456_v23 }
  0xe8   : > { %526 = vxpose.xlu1.b32.end [2/2] (short) (narrow) %v491_v25, 8 }
 0x174   : > { %v509_v32 = vpop.trf.xlu0 }
 0x175   : > { %561 = vst [vmem:[#allocation1] ss:$4 sm:$0xff] %v509_v32 }
 0x184   : > { %v541_v33 = vpop.trf.xlu1 }
 0x185   : > { %563 = vst [vmem:[#allocation1 + $0x1] ss:$4 sm:$0xff] %v541_v33 }
 0x18c   : > { %v564_v34 = vld.sshfl [vmem:[#allocation1] sm:$0xff pattern:$0x73625140] }
 0x18d   : > { %v565_v35 = vsel %vm228_vm0, %v564_v34, 0 }
 0x18e   : > { %v585_v36 = vand.u32 4294901760, %v565_v35 }
 0x190   : > { %621 = vmatmul.f32.vlgmr.msrb.gmra.mxu3 %v585_v36  ;;  %v586_v37 = vsub.f32 %v565_v35, %v585_v36 }
 0x191   : > { %718 = vmatpush.msrb.mxu3 %v1208_v54 }
 0x192   : > { %v587_v38 = vand.u32 4294901760, %v586_v37 }
 0x193   : > { %720 = vmatpush.msrb.mxu3 %v583_v27 }
 0x194   : > { %v588_v39 = vsub.f32 %v586_v37, %v587_v38 }
 0x196   : > { %v589_v40 = vand.u32 4294901760, %v588_v39 }
 0x198   : > { %590 = vmatmul.f32.vlgmr.msrb.gmra.mxu2 %v589_v40  ;;  %672 = vmatmul.f32.vlgmr.msra.gmra.mxu3 %v587_v38 }
 0x199   : > { %693 = vmatpush.msrb.mxu2 %v610_v62 }
 0x19b   : > { %697 = vmatpush.msrb.mxu2 %v616_v29 }
 0x1a0   : > { %647 = vmatmul.f32.vlgmr.msra.gmra.mxu2 %v586_v37  ;;  %722 = vmatmul.f32.vlgmr.msrb.gmra.mxu3 %v585_v36 }
 0x1a8   : > { %699 = vmatmul.f32.vlgmr.msrb.gmra.mxu2 %v585_v36 }
 0x213   : > { %v622_v41 = vpop.f32.mrf.mxu3 }
 0x21b   : > { %v591_v42 = vpop.f32.mrf.mxu2  ;;  %v673_v43 = vpop.f32.mrf.mxu3 }
 0x21c   : > { %v623_v45 = vadd.f32 %v622_v41, %v591_v42 }
 0x223   : > { %v648_v44 = vpop.f32.mrf.mxu2  ;;  %v723_v50 = vpop.f32.mrf.mxu3 }
 0x224   : > { %v649_v46 = vadd.f32 %v648_v44, %v623_v45 }
 0x226   : > { %v674_v47 = vadd.f32 %v673_v43, %v649_v46 }
 0x22b   : > { %v700_v48 = vpop.f32.mrf.mxu2 }
 0x22c   : > { %v701_v49 = vadd.f32 %v700_v48, %v674_v47 }
 0x22e   : > { %v724_v51 = vadd.f32 %v723_v50, %v701_v49 }
 0x230   : > { %729 = vxpose.xlu2.b32.start.end [1/1] (short) (narrow) %v724_v51, 8  ;;  %v727_v52 = vrot.slane %v724_v51, 2 }
 0x238   : > { %761 = vxpose.xlu2.b32.start.end [1/1] (short) (narrow) %v727_v52, 8 }
 0x2c9   : > { %v745_v53 = vpop.trf.xlu2 }
 0x2ca   : > { %794 = vst.msk [vmem:[%s220_s4] sm:$0x3] %vm793_vm1, %v745_v53 }
 0x2d1   : > { %v777_v54 = vpop.trf.xlu2 }
 0x2d2   : > { %795 = vst.msk [vmem:[%s220_s4 + $0x2] sm:$0x3] %vm793_vm1, %v777_v54 }
 0x2d3 PF: > { %s16_s19 = sadd.s32 1, %s1081_s19   ;;  %s1259_s12 = smov %s1057_s13 }
 0x2d4   : > { %p13_p2 = scmp.ge.s32.totalorder %s16_s19, 6   ;;  %s1260_s13 = smov %s1061_s14 }
 0x2d5   : > { %s1261_s14 = smov %s1172_s5  ;;  %s1262_s15 = smov %s1073_s17 }
 0x2d6   : > { %s1263_s16 = smov %s1077_s18  ;;  %s1264_s17 = smov %s1267_s21 }
 0x2d7   : > { %s1265_s18 = smov %s1271_s22  ;;  %15 = sbr.rel (!%p13_p2) target bundleno = 5 (0x5), region = 73 }
 0x2dc   :  { %826 = vsyncpa [#allocation3], 1 }
 0x2dd   :  { %828 = vsyncpa [#allocation3 + $0x1], 1 }

</bundles_post_ra>
